<compile_context>
chip_gen: v7x
topology: tpu7x:2x2x1
jax: 0.10.0
libtpu: 0.0.40
codegen_flags: <defaults>
</compile_context>

<pallas_src>
import math

import jax
import jax.numpy as jnp
from jax import lax
from jax.experimental import pallas as pl
from jax.experimental.pallas import tpu as pltpu


def _rup(x, m):
    return (x + m - 1) // m * m


# ----------------------------------------------------------------------------
# Fused matmul kernel: out = act( (A @ B) * scale + shift ), single K block.
# ----------------------------------------------------------------------------
def _make_matmul_kernel(relu):
    def kernel(a_ref, b_ref, scale_ref, shift_ref, o_ref):
        y = jnp.dot(a_ref[...], b_ref[...], preferred_element_type=jnp.float32)
        y = y * scale_ref[...] + shift_ref[...]
        if relu:
            y = jnp.maximum(y, 0.0)
        o_ref[...] = y.astype(o_ref.dtype)
    return kernel


def pallas_matmul_fused(a, b, scale, shift, relu=False):
    """a: (M,K), b: (K,N), scale/shift: (1,N) broadcast over rows. Returns f32 (M,N)."""
    M, K = a.shape
    K2, N = b.shape
    assert K == K2

    tm = min(256, _rup(M, 16))          # bf16 sublane packing -> multiples of 16
    Mp = _rup(M, tm)
    Np = _rup(N, 128)
    tn = 256 if Np % 256 == 0 else 128  # 256-wide tiles feed v6e/v7x MXU; 128 ok on v5e
    Kp = _rup(K, 16)                    # single full-extent K block (no K grid axis)

    a_p = a.astype(jnp.bfloat16)
    if (M, K) != (Mp, Kp):
        a_p = jnp.pad(a_p, ((0, Mp - M), (0, Kp - K)))
    b_p = b.astype(jnp.bfloat16)
    if (K, N) != (Kp, Np):
        b_p = jnp.pad(b_p, ((0, Kp - K), (0, Np - N)))
    sc_p = scale.astype(jnp.float32)
    sh_p = shift.astype(jnp.float32)
    if N != Np:
        sc_p = jnp.pad(sc_p, ((0, 0), (0, Np - N)))
        sh_p = jnp.pad(sh_p, ((0, 0), (0, Np - N)))

    grid = (Mp // tm, Np // tn)
    # VMEM budget (worst conv: K=4608, tn=256, tm<=256):
    #   2*(tm,Kp)bf16 + 2*(Kp,tn)bf16 + 2*(tm,tn)f32  ~= 6 MiB  -> fits default scoped
    #   VMEM on v5e (16 MiB) / v6e (32 MiB) / v7x (32 MiB).
    out = pl.pallas_call(
        _make_matmul_kernel(relu),
        out_shape=jax.ShapeDtypeStruct((Mp, Np), jnp.float32),
        grid_spec=pltpu.PrefetchScalarGridSpec(
            num_scalar_prefetch=0,
            grid=grid,
            in_specs=[
                pl.BlockSpec((tm, Kp), lambda i, j: (i, 0)),
                pl.BlockSpec((Kp, tn), lambda i, j: (0, j)),
                pl.BlockSpec((1, tn), lambda i, j: (0, j)),
                pl.BlockSpec((1, tn), lambda i, j: (0, j)),
            ],
            out_specs=pl.BlockSpec((tm, tn), lambda i, j: (i, j)),
        ),
        compiler_params=pltpu.CompilerParams(
            dimension_semantics=("parallel", "parallel")),
    )(a_p, b_p, sc_p, sh_p)
    if (M, N) != (Mp, Np):
        out = out[:M, :N]
    return out


# ----------------------------------------------------------------------------
# Conv2d = im2col (JAX glue) + fused Pallas matmul (bias / folded BN + ReLU epilogue)
# ----------------------------------------------------------------------------
def conv2d(x_nhwc, cp, padding=1, relu=True):
    # TODO(synk): im2col still duplicates activations kh*kw times in HBM; folding the
    # patch gather into the matmul DMA would need a manual-copy kernel.
    N, H, W, Cin = x_nhwc.shape
    kh, kw = cp["kh"], cp["kw"]
    xp = x_nhwc
    if padding:
        xp = jnp.pad(x_nhwc, ((0, 0), (padding, padding), (padding, padding), (0, 0)))
    Ho = H + 2 * padding - kh + 1
    Wo = W + 2 * padding - kw + 1
    patches = [xp[:, dh:dh + Ho, dw:dw + Wo, :] for dh in range(kh) for dw in range(kw)]
    patch = jnp.concatenate(patches, axis=-1)                 # (N,Ho,Wo, kh*kw*Cin)
    a = patch.reshape(N * Ho * Wo, kh * kw * Cin)
    out = pallas_matmul_fused(a, cp["w"], cp["scale"], cp["shift"], relu=relu)
    return out.reshape(N, Ho, Wo, cp["w"].shape[1])


def maxpool(x_nhwc, kernel, stride, pad):
    return lax.reduce_window(
        x_nhwc, -jnp.inf, lax.max,
        window_dimensions=(1, kernel[0], kernel[1], 1),
        window_strides=(1, stride[0], stride[1], 1),
        padding=((0, 0), (pad[0], pad[0]), (pad[1], pad[1]), (0, 0)))


# ----------------------------------------------------------------------------
# Fused bidirectional LSTM recurrence kernel.
#  - grid over time, both directions in one call.
#  - h/c per direction carried in VMEM scratch.
#  - backward direction reads xw at original time (T-1-t) via its BlockSpec index_map
#    and writes its hidden state back into output slot (T-1-t).
#  - both outputs are VMEM-resident across the whole grid (constant out index_map),
#    written back to HBM once at the end.
# ----------------------------------------------------------------------------
def _make_bilstm_kernel(nh, T):
    def kernel(xwf_ref, xwb_ref, whhf_ref, whhb_ref, of_ref, ob_ref,
               hf_ref, cf_ref, hb_ref, cb_ref):
        t = pl.program_id(0)

        @pl.when(t == 0)
        def _():
            hf_ref[...] = jnp.zeros_like(hf_ref)
            cf_ref[...] = jnp.zeros_like(cf_ref)
            hb_ref[...] = jnp.zeros_like(hb_ref)
            cb_ref[...] = jnp.zeros_like(cb_ref)

        def cell(xw, whhT_ref, h_ref, c_ref):
            gates = xw + jnp.dot(h_ref[...], whhT_ref[...],
                                 preferred_element_type=jnp.float32)
            i = jax.nn.sigmoid(gates[:, 0 * nh:1 * nh])
            f = jax.nn.sigmoid(gates[:, 1 * nh:2 * nh])
            g = jnp.tanh(gates[:, 2 * nh:3 * nh])
            o = jax.nn.sigmoid(gates[:, 3 * nh:4 * nh])
            c_new = f * c_ref[...] + i * g
            h_new = o * jnp.tanh(c_new)
            c_ref[...] = c_new
            h_ref[...] = h_new
            return h_new

        of_ref[t] = cell(xwf_ref[0], whhf_ref, hf_ref, cf_ref)
        ob_ref[T - 1 - t] = cell(xwb_ref[0], whhb_ref, hb_ref, cb_ref)

    return kernel


def bilstm_fused(xw_f, xw_b, whhT_f, whhT_b, nh):
    """xw_f/xw_b: (T,B,4nh) precomputed x@W_ih^T + b_ih + b_hh per direction.
    Returns (h_fwd, h_bwd), each (T,B,nh) in original time order."""
    T, B, G = xw_f.shape
    return pl.pallas_call(
        _make_bilstm_kernel(nh, T),
        out_shape=(jax.ShapeDtypeStruct((T, B, nh), jnp.float32),
                   jax.ShapeDtypeStruct((T, B, nh), jnp.float32)),
        grid_spec=pltpu.PrefetchScalarGridSpec(
            num_scalar_prefetch=0,
            grid=(T,),
            in_specs=[
                pl.BlockSpec((1, B, G), lambda t: (t, 0, 0)),
                pl.BlockSpec((1, B, G), lambda t: (T - 1 - t, 0, 0)),
                pl.BlockSpec((nh, G), lambda t: (0, 0)),
                pl.BlockSpec((nh, G), lambda t: (0, 0)),
            ],
            out_specs=[
                pl.BlockSpec((T, B, nh), lambda t: (0, 0, 0)),
                pl.BlockSpec((T, B, nh), lambda t: (0, 0, 0)),
            ],
            scratch_shapes=[pltpu.VMEM((B, nh), jnp.float32),
                            pltpu.VMEM((B, nh), jnp.float32),
                            pltpu.VMEM((B, nh), jnp.float32),
                            pltpu.VMEM((B, nh), jnp.float32)],
        ),
        compiler_params=pltpu.CompilerParams(
            dimension_semantics=("arbitrary",)),
    )(xw_f.astype(jnp.float32), xw_b.astype(jnp.float32),
      whhT_f.astype(jnp.float32), whhT_b.astype(jnp.float32))


# ----------------------------------------------------------------------------
# One-time parameter prep: weight transposes/reshapes, BN folding, bf16 weight cast.
# ----------------------------------------------------------------------------
def prepare_params(p):
    q = {"nh": p["nh"], "nclass": p["nclass"]}

    def conv_prep(name, bn=None):
        w, b = p[name + "_w"], p[name + "_b"]
        Cout, Cin, kh, kw = w.shape
        wmat = jnp.transpose(w, (2, 3, 1, 0)).reshape(kh * kw * Cin, Cout)
        if bn is None:
            scale = jnp.ones((1, Cout), jnp.float32)
            shift = b.reshape(1, Cout).astype(jnp.float32)
        else:
            gamma, beta, mean, var, eps = bn
            s = gamma / jnp.sqrt(var + eps)
            scale = s.reshape(1, Cout).astype(jnp.float32)
            shift = (beta + s * (b - mean)).reshape(1, Cout).astype(jnp.float32)
        return {"w": wmat.astype(jnp.bfloat16), "scale": scale, "shift": shift,
                "kh": kh, "kw": kw}

    q["conv1"] = conv_prep("conv1")
    q["conv2"] = conv_prep("conv2")
    q["conv3"] = conv_prep("conv3", p["bn3"])
    q["conv4"] = conv_prep("conv4")
    q["conv5"] = conv_prep("conv5", p["bn5"])
    q["conv6"] = conv_prep("conv6")
    q["conv7"] = conv_prep("conv7")

    nh = p["nh"]
    wf_ih, wf_hh, bf_ih, bf_hh = p["lstm"]["fwd"]
    wb_ih, wb_hh, bb_ih, bb_hh = p["lstm"]["bwd"]
    # Combined input-to-hidden projection: one matmul covers both directions.
    q["wih_T"] = jnp.concatenate([wf_ih.T, wb_ih.T], axis=1).astype(jnp.bfloat16)  # (512, 8nh)
    q["b_gate"] = jnp.concatenate([bf_ih + bf_hh, bb_ih + bb_hh]).reshape(1, 8 * nh)
    q["ones_gate"] = jnp.ones((1, 8 * nh), jnp.float32)
    q["whhT_f"] = wf_hh.T.astype(jnp.float32)   # (nh, 4nh)
    q["whhT_b"] = wb_hh.T.astype(jnp.float32)

    q["lin_wT"] = p["lin_w"].T.astype(jnp.bfloat16)           # (2nh, nclass)
    q["lin_b"] = p["lin_b"].reshape(1, -1).astype(jnp.float32)
    q["ones_lin"] = jnp.ones((1, p["nclass"]), jnp.float32)
    return q


# ----------------------------------------------------------------------------
# Full forward
# ----------------------------------------------------------------------------
def crnn_forward(x_nchw, q):
    # TODO(synk): F.interpolate(bilinear) branch not implemented; inputs must have H == imgH.
    x = jnp.transpose(x_nchw, (0, 2, 3, 1)).astype(jnp.float32)  # NCHW -> NHWC

    x = conv2d(x, q["conv1"], padding=1)
    x = maxpool(x, (2, 2), (2, 2), (0, 0))
    x = conv2d(x, q["conv2"], padding=1)
    x = maxpool(x, (2, 2), (2, 2), (0, 0))
    x = conv2d(x, q["conv3"], padding=1)          # BN folded into epilogue
    x = conv2d(x, q["conv4"], padding=1)
    x = maxpool(x, (2, 2), (2, 1), (0, 1))
    x = conv2d(x, q["conv5"], padding=1)          # BN folded into epilogue
    x = conv2d(x, q["conv6"], padding=1)
    x = maxpool(x, (2, 2), (2, 1), (0, 1))
    x = conv2d(x, q["conv7"], padding=0)          # 2x2 conv, no pad

    N, H, W, C = x.shape
    assert H == 1, f"Expected height 1 after CNN, got {H}"
    conv = jnp.transpose(x[:, 0], (1, 0, 2))      # (T, B, C)
    T, B, C = conv.shape
    nh, nclass = q["nh"], q["nclass"]

    # Input-to-hidden projections for both LSTM directions in one fused matmul.
    xw = pallas_matmul_fused(conv.reshape(T * B, C), q["wih_T"],
                             q["ones_gate"], q["b_gate"]).reshape(T, B, 8 * nh)
    xw_f = xw[..., :4 * nh]
    xw_b = xw[..., 4 * nh:]

    h_f, h_b = bilstm_fused(xw_f, xw_b, q["whhT_f"], q["whhT_b"], nh)
    rnn_out = jnp.concatenate([h_f, h_b], axis=-1)             # (T, B, 2nh)

    lin = pallas_matmul_fused(rnn_out.reshape(T * B, 2 * nh), q["lin_wT"],
                              q["ones_lin"], q["lin_b"]).reshape(T, B, nclass)
    # PyTorch: output.permute(1,0,2).reshape(-1, nclass)  -> batch-major (B*T, nclass)
    out = jnp.transpose(lin, (1, 0, 2)).reshape(-1, nclass)
    return out


# ----------------------------------------------------------------------------
# Deterministic parameter initialization (shapes from CRNN.__init__)
# ----------------------------------------------------------------------------
def init_params(key, nc=1, nh=32, nclass=37):
    keys = iter(jax.random.split(key, 64))

    def u(shape, bound):
        return jax.random.uniform(next(keys), shape, jnp.float32, -bound, bound)

    def conv_p(cin, cout, k):
        bound = 1.0 / math.sqrt(cin * k * k)
        return u((cout, cin, k, k), bound), u((cout,), bound)

    def bn_p(c):
        gamma = 1.0 + 0.1 * jax.random.normal(next(keys), (c,), jnp.float32)
        beta = 0.1 * jax.random.normal(next(keys), (c,), jnp.float32)
        mean = 0.1 * jax.random.normal(next(keys), (c,), jnp.float32)
        var = jax.random.uniform(next(keys), (c,), jnp.float32, 0.5, 1.5)
        return (gamma, beta, mean, var, 1e-5)

    p = {"nh": nh, "nclass": nclass}
    p["conv1_w"], p["conv1_b"] = conv_p(nc, 64, 3)
    p["conv2_w"], p["conv2_b"] = conv_p(64, 128, 3)
    p["conv3_w"], p["conv3_b"] = conv_p(128, 256, 3)
    p["bn3"] = bn_p(256)
    p["conv4_w"], p["conv4_b"] = conv_p(256, 256, 3)
    p["conv5_w"], p["conv5_b"] = conv_p(256, 512, 3)
    p["bn5"] = bn_p(512)
    p["conv6_w"], p["conv6_b"] = conv_p(512, 512, 3)
    p["conv7_w"], p["conv7_b"] = conv_p(512, 512, 2)

    lbound = 1.0 / math.sqrt(nh)
    lstm = {}
    for d in ("fwd", "bwd"):
        lstm[d] = (u((4 * nh, 512), lbound),   # weight_ih
                   u((4 * nh, nh), lbound),    # weight_hh
                   u((4 * nh,), lbound),       # bias_ih
                   u((4 * nh,), lbound))       # bias_hh
    p["lstm"] = lstm

    lin_bound = 1.0 / math.sqrt(2 * nh)
    p["lin_w"] = u((nclass, 2 * nh), lin_bound)
    p["lin_b"] = u((nclass,), lin_bound)
    return p


if __name__ == "__main__":
    key = jax.random.PRNGKey(0)
    kp, kx = jax.random.split(key)

    nh, nclass = 32, 37
    raw_params = init_params(kp, nc=1, nh=nh, nclass=nclass)
    params = prepare_params(raw_params)     # one-time weight prep (transposes, BN fold, bf16)

    # Input: NCHW, batch=2, nc=1, H=imgH=32, W=16 -> CNN output T = W/4 + 1 = 5
    x = jax.random.normal(kx, (2, 1, 32, 16), jnp.float32)

    out = crnn_forward(x, params)
    out = jax.block_until_ready(out)

    assert out.shape == (2 * 5, nclass), out.shape
    assert bool(jnp.all(jnp.isfinite(out)))
    print("KERNEL_OK")
</pallas_src>

<mosaic_0001>
module attributes {stable_mosaic.version = 11 : i64} {
  func.func @kernel(%arg0: i32, %arg1: i32, %arg2: memref<256x16xbf16, #tpu.memory_space<vmem>>, %arg3: memref<16x128xbf16, #tpu.memory_space<vmem>>, %arg4: memref<1x128xf32, #tpu.memory_space<vmem>>, %arg5: memref<1x128xf32, #tpu.memory_space<vmem>>, %arg6: memref<256x128xf32, #tpu.memory_space<vmem>>) attributes {dimension_semantics = [#tpu.dimension_semantics<parallel>, #tpu.dimension_semantics<parallel>], iteration_bounds = array<i64: 4, 1>, scalar_prefetch = 0 : i64, scratch_operands = 0 : i64, tpu.core_type = #tpu.core_type<tc>, window_params = [{transform_indices = @transform_0, window_bounds = array<i64: 256, 16>}, {transform_indices = @transform_1, window_bounds = array<i64: 16, 128>}, {transform_indices = @transform_2, window_bounds = array<i64: 1, 128>}, {transform_indices = @transform_3, window_bounds = array<i64: 1, 128>}, {transform_indices = @transform_4, window_bounds = array<i64: 256, 128>}]} {
    %c0 = arith.constant 0 : index
    %c0_0 = arith.constant 0 : index
    %0 = vector.load %arg2[%c0, %c0_0] : memref<256x16xbf16, #tpu.memory_space<vmem>>, vector<256x16xbf16>
    %c0_1 = arith.constant 0 : index
    %c0_2 = arith.constant 0 : index
    %1 = vector.load %arg3[%c0_1, %c0_2] : memref<16x128xbf16, #tpu.memory_space<vmem>>, vector<16x128xbf16>
    %cst = arith.constant dense<0.000000e+00> : vector<256x128xf32>
    %2 = tpu.matmul %0, %1, %cst {dimension_numbers = #tpu.dot_dimension_numbers<[1], [0], [0], [1], [0, 0, 1, 1], [], []>} : vector<256x16xbf16>, vector<16x128xbf16>, vector<256x128xf32> -> vector<256x128xf32>
    %c0_3 = arith.constant 0 : index
    %c0_4 = arith.constant 0 : index
    %3 = vector.load %arg4[%c0_3, %c0_4] : memref<1x128xf32, #tpu.memory_space<vmem>>, vector<1x128xf32>
    %4 = vector.broadcast %3 : vector<1x128xf32> to vector<256x128xf32>
    %5 = arith.mulf %2, %4 : vector<256x128xf32>
    %c0_5 = arith.constant 0 : index
    %c0_6 = arith.constant 0 : index
    %6 = vector.load %arg5[%c0_5, %c0_6] : memref<1x128xf32, #tpu.memory_space<vmem>>, vector<1x128xf32>
    %7 = vector.broadcast %6 : vector<1x128xf32> to vector<256x128xf32>
    %8 = arith.addf %5, %7 : vector<256x128xf32>
    %cst_7 = arith.constant 0.000000e+00 : f32
    %9 = vector.broadcast %cst_7 : f32 to vector<256x128xf32>
    %10 = arith.maximumf %8, %9 : vector<256x128xf32>
    %c0_8 = arith.constant 0 : index
    %c0_9 = arith.constant 0 : index
    %11 = vector.load %arg6[%c0_8, %c0_9] : memref<256x128xf32, #tpu.memory_space<vmem>>, vector<256x128xf32>
    tpu.vector_store %arg6[%c0_8, %c0_9], %10 {strides = array<i32>} : memref<256x128xf32, #tpu.memory_space<vmem>>, vector<256x128xf32>,
    return
  }
  func.func @transform_0(%arg0: i32, %arg1: i32) -> (i32, i32) {
    %c0_i32 = arith.constant 0 : i32
    %c0_i32_0 = arith.constant 0 : i32
    return %arg0, %c0_i32 : i32, i32
  }
  func.func @transform_1(%arg0: i32, %arg1: i32) -> (i32, i32) {
    %c0_i32 = arith.constant 0 : i32
    %c0_i32_0 = arith.constant 0 : i32
    return %c0_i32, %arg1 : i32, i32
  }
  func.func @transform_2(%arg0: i32, %arg1: i32) -> (i32, i32) {
    %c0_i32 = arith.constant 0 : i32
    %c0_i32_0 = arith.constant 0 : i32
    return %c0_i32, %arg1 : i32, i32
  }
  func.func @transform_3(%arg0: i32, %arg1: i32) -> (i32, i32) {
    %c0_i32 = arith.constant 0 : i32
    %c0_i32_0 = arith.constant 0 : i32
    return %c0_i32, %arg1 : i32, i32
  }
  func.func @transform_4(%arg0: i32, %arg1: i32) -> (i32, i32) {
    %c0_i32 = arith.constant 0 : i32
    return %arg0, %arg1 : i32, i32
  }
}

</mosaic_0001>

<bundles_post_ra>
// kernel: tpu_custom_call.1
= control target key start
LH: loop header
LB: loop body
LE: loop exit
PB: predicated region body
PF: predicated region fallthrough
CT: control target
= control target key end

     0   :  { %9 = vsyncpa [#allocation3], 0  ;;  %s1408_s0 = inlined_call_operand.vmem [shape: bf16[1024,16], index: 0, kind: input, shape index: {}]   ;;  %s1409_s1 = inlined_call_operand.vmem [shape: bf16[16,128], index: 1, kind: input, shape index: {}]   ;;  %s1410_s2 = inlined_call_operand.vmem [shape: f32[1,128], index: 2, kind: input, shape index: {}]   ;;  %s1411_s3 = inlined_call_operand.vmem [shape: f32[1,128], index: 3, kind: input, shape index: {}]   ;;  %s1412_s4 = inlined_call_operand.hbm [shape: f32[1024,128], index: 4, kind: output, shape index: {}]  }
   0x1   :  { %11 = vsyncpa [#allocation3 + $0x1], 0  ;;  %s1144_s15 = smov 0   ;;  %s1146_s16 = smov 0  }
   0x2   :  { %s1148_s17 = smov 0   ;;  %s1150_s18 = smov 0  }
   0x3   :  { %s1152_s19 = smov 0   ;;  %s1154_s20 = smov 0  }
   0x4 LB: > { %s857_s21 = sadd.s32 4294967295, %s1114_s20   ;;  %s858_s22 = sadd.s32 4294967294, %s1114_s20   ;;  %s1114_s20 = sphi %s1154_s20, %s17_s20   ;;  %s1110_s19 = sphi %s1152_s19, %s1419_s19   ;;  %s1106_s18 = sphi %s1150_s18, %s1418_s18   ;;  %s1102_s17 = sphi %s1148_s17, %s1417_s17   ;;  %s1098_s16 = sphi %s1146_s16, %s1416_s16   ;;  %s1094_s15 = sphi %s1144_s15, %s1415_s15  }
   0x5   : > { %s29_s23 = sadd.s32 1, %s1110_s19  ;;  %s142_s24 = sadd.s32 1, %s1102_s17 }
   0x6   : > { %p31_p0 = scmp.ge.s32.totalorder %s29_s23, 4  ;;  %p152_p1 = scmp.ne.s32.totalorder %s1102_s17, %s1098_s16 }
   0x7   : > { %p153_p2 = scmp.eq.s32.totalorder %s857_s21, 3  ;;  %p158_p3 = scmp.ne.s32.totalorder %s1098_s16, %s1094_s15 }
   0x8   : > { %s1421_s23 = smov (%p31_p0, %s29_s23), 0  ;;  %p159_p5 = scmp.eq.s32.totalorder %s858_s22, 3 }
   0x9   : > { %p1184_p4 = por %p153_p2, %p152_p1  ;;  %s137_s26 = ssub.s32 %s1110_s19, %s1421_s23 }
   0xa   : > { %p864_p6 = scmp.ge.s32.totalorder %s1114_s20, 1  ;;  %p140_p7 = scmp.eq.s32.totalorder %s137_s26, 0 }
   0xb   : > { %p1191_p8 = por %p159_p5, %p158_p3  ;;  %p205_p9 = scmp.lt.s32.totalorder %s1114_s20, 5 }
   0xc   : > { %s1197_s28 = scalar_select %p140_p7, %s1102_s17, %s142_s24  }
   0xd   : > { %p206_p10 = pnand %p864_p6, %p205_p9 }
   0xe   : > { %v1019_v0 = vld [vmem:[%s1409_s1] sm:$0xff] (!%p206_p10)   ;;  %s866_s5 = sshll.u32 (!%p206_p10), %s1106_s18, 5  ;;  %vm379_vm0 = vcmask (!%p206_p10), 130048   ;;  %s238_s10 = sand.u32 (!%p206_p10), 1, %s1098_s16  }
   0xf   : > { %209 = sbr.rel (%p206_p10) target bundleno = 288 (0x120), region = 36  ;;  %p242_p11 = scmp.lt.s32.totalorder (!%p206_p10), %s866_s5, 127  ;;  %926 = vmatprep.subr.bf16.mxu0 (!%p206_p10), %v1019_v0  ;;  %960 = vmatprep.subr.bf16.mxu1 (!%p206_p10), %v1019_v0  ;;  %v1244_v17 = vld [vmem:[%s1410_s2] ss:$0 sm:$0xff] (!%p206_p10) }
  0x10   : > { %927 = vmatpush3.bf16.msra.mxu0 (!%p206_p10), %v1019_v0  ;;  %961 = vmatpush3.bf16.msra.mxu1 (!%p206_p10), %v1019_v0  ;;  %v1249_v19 = vld [vmem:[%s1411_s3] ss:$0 sm:$0xff] (!%p206_p10)  ;;  %s865_s21 = sshll.u32 (!%p206_p10), %s238_s10, 8  ;;  %s908_s24 = sshll.u32 (!%p206_p10), %s1106_s18, 12 }
  0x11   : > { %s1268_s22 = scalar_lea.vmem (!%p206_p10), [#allocation2], %s865_s21  ;;  %s1351_s30 = scalar_lea.hbm (!%p206_p10), %s1412_s4, %s908_s24 }
  0x12   : > { %s746_s26 = sshll.u32 (!%p206_p10), %s1268_s22, 4  ;;  %s1116_s7 = smov (!%p206_p10), [#allocation2]   ;;  %s1353_s26 = int_to_ptr.vmem [resolvable:$true] %s746_s26 }
  0x13   : > { %s1040_s8 = sshll.u32 (!%p206_p10), %s1116_s7, 4  ;;  %s1041_s8 = int_to_ptr.vmem [resolvable:$false] %s1040_s8 }
  0x14   : > { %p1043_p1 = scmp.lt.s32.totalorder (!%p206_p10), %s1353_s26, %s1041_s8 }
  0x16   : > { %s1423_s5 = smov (!%p242_p11, %s866_s5), 127 }
  0x17   : > { %s867_s6 = sshll.u32 %s1423_s5, 2  ;;  %s1362_s5 = scalar_lea.sflag [#allocation3], %s238_s10 }
  0x18   : > { %s1206_s9 = scalar_lea.vmem %s1408_s0, %s867_s6  ;;  %s1036_s6 = scalar_lea.vmem %s1353_s26, 4096 }
  0x19   : > { %v1020_v1 = vld [vmem:[%s1206_s9] sm:$0xff]   ;;  %v1022_v3 = vld [vmem:[%s1206_s9 + $0x8] sm:$0xff]   ;;  %v1024_v5 = vld [vmem:[%s1206_s9 + $0x10] sm:$0xff]   ;;  %p1037_p12 = scmp.ne.s32.totalorder %s1353_s26, %s1036_s6 }
  0x1a   : > { %v1021_v2 = vld [vmem:[%s1206_s9 + $0x40] sm:$0xff]   ;;  %928 = vmatprep.mubr.msk.bf16.mxu0 %vm379_vm0, %v1020_v1  ;;  %v1023_v4 = vld [vmem:[%s1206_s9 + $0x48] sm:$0xff]   ;;  %v1025_v6 = vld [vmem:[%s1206_s9 + $0x50] sm:$0xff]  }
  0x1b   : > { %944 = vmatprep.mubr.msk.bf16.mxu1 %vm379_vm0, %v1021_v2  ;;  %929 = vmatmul.mubr.msk.bf16.vlgmr.msra.gmra.mrb[0].mxu0 %vm379_vm0, %v1022_v3  ;;  %v1026_v7 = vld [vmem:[%s1206_s9 + $0x18] sm:$0xff]   ;;  %v1028_v9 = vld [vmem:[%s1206_s9 + $0x20] sm:$0xff]   ;;  %v1030_v11 = vld [vmem:[%s1206_s9 + $0x28] sm:$0xff]   ;;  %p1038_p13 = pnand %p1037_p12, %p1184_p4 }
  0x1c   : > { %945 = vmatmul.mubr.msk.bf16.vlgmr.msra.gmra.mrb[0].mxu1 %vm379_vm0, %v1023_v4  ;;  %932 = vmatprep.mubr.msk.bf16.mxu0 %vm379_vm0, %v1024_v5  ;;  %v1027_v8 = vld [vmem:[%s1206_s9 + $0x58] sm:$0xff]   ;;  %v1029_v10 = vld [vmem:[%s1206_s9 + $0x60] sm:$0xff]   ;;  %v1031_v12 = vld [vmem:[%s1206_s9 + $0x68] sm:$0xff]  }
  0x1d   : > { %948 = vmatprep.mubr.msk.bf16.mxu1 %vm379_vm0, %v1025_v6  ;;  %v1032_v13 = vld [vmem:[%s1206_s9 + $0x30] sm:$0xff]   ;;  %v1034_v15 = vld [vmem:[%s1206_s9 + $0x38] sm:$0xff]   ;;  %p1039_p0 = pneg %p1038_p13 }
  0x1e   : > { %v1033_v14 = vld [vmem:[%s1206_s9 + $0x70] sm:$0xff]   ;;  %v1035_v16 = vld [vmem:[%s1206_s9 + $0x78] sm:$0xff]   ;;  %s1042_s9 = scalar_lea.vmem %s1041_s8, 8192 }
  0x1f   : > { %p1044_p2 = scmp.lt.s32.totalorder %s1042_s9, %s1036_s6 }
  0x21   : > { %p1045_p3 = por %p1044_p2, %p1043_p1 }
  0x23   : > { %933 = vmatmul.mubr.msk.bf16.gmra.mrb[4].mxu0 %vm379_vm0, %v1026_v7  ;;  %p1046_p5 = pnand %p1045_p3, %p1039_p0 }
  0x24   : > { %949 = vmatmul.mubr.msk.bf16.gmra.mrb[4].mxu1 %vm379_vm0, %v1027_v8  ;;  %936 = vmatprep.mubr.msk.bf16.mxu0 %vm379_vm0, %v1028_v9 }
  0x25   : > { %952 = vmatprep.mubr.msk.bf16.mxu1 %vm379_vm0, %v1029_v10 }
  0x2b   : > { %937 = vmatmul.mubr.msk.bf16.gmra.mrb[8].mxu0 %vm379_vm0, %v1030_v11 }
  0x2c   : > { %953 = vmatmul.mubr.msk.bf16.gmra.mrb[8].mxu1 %vm379_vm0, %v1031_v12  ;;  %940 = vmatprep.mubr.msk.bf16.mxu0 %vm379_vm0, %v1032_v13 }
  0x2d   : > { %956 = vmatprep.mubr.msk.bf16.mxu1 %vm379_vm0, %v1033_v14 }
  0x33   : > { %941 = vmatmul.mubr.msk.bf16.gmra.mrb[12].mxu0 %vm379_vm0, %v1034_v15 }
  0x34   : > { %957 = vmatmul.mubr.msk.bf16.gmra.mrb[12].mxu1 %vm379_vm0, %v1035_v16 }
  0xee   : > { %v930_v18 = vpop.f32.mrb[0].mxu0 }
  0xef   : > { %v598_v20 = vmul.f32 %v930_v18, %v1244_v17  ;;  %v946_v21 = vpop.f32.mrb[0].mxu1  ;;  %v462_v22 = vpop.f32.mrb[1].mxu0 }
  0xf0   : > { %v614_v23 = vmul.f32 %v946_v21, %v1244_v17  ;;  %v596_v24 = vmul.f32 %v1244_v17, %v462_v22  ;;  %v526_v25 = vpop.f32.mrb[1].mxu1  ;;  %v931_v26 = vpop.f32.mrb[2].mxu0 }
  0xf1   : > { %v637_v27 = vadd.f32 %v1249_v19, %v598_v20  ;;  %v612_v28 = vmul.f32 %v1244_v17, %v526_v25  ;;  %v599_v29 = vmul.f32 %v931_v26, %v1244_v17  ;;  %v947_v30 = vpop.f32.mrb[2].mxu1  ;;  %v465_v31 = vpop.f32.mrb[3].mxu0 }
  0xf2   : > { %v653_v32 = vadd.f32 %v1249_v19, %v614_v23  ;;  %v635_v33 = vadd.f32 %v1249_v19, %v596_v24  ;;  %v615_v34 = vmul.f32 %v947_v30, %v1244_v17  ;;  %v597_v35 = vmul.f32 %v1244_v17, %v465_v31  ;;  %v529_v36 = vpop.f32.mrb[3].mxu1 }
  0xf3   : > { %v669_v37 = vmax.f32 %v637_v27, 0.0  ;;  %v651_v38 = vadd.f32 %v1249_v19, %v612_v28  ;;  %v638_v39 = vadd.f32 %v1249_v19, %v599_v29  ;;  %v613_v40 = vmul.f32 %v1244_v17, %v529_v36 }
  0xf4   : > { %v685_v41 = vmax.f32 %v653_v32, 0.0  ;;  %v667_v42 = vmax.f32 %v635_v33, 0.0  ;;  %v654_v43 = vadd.f32 %v1249_v19, %v615_v34  ;;  %v636_v44 = vadd.f32 %v1249_v19, %v597_v35 }
  0xf5   : > { %701 = vst [vmem:[%s1268_s22 + $0x10] sm:$0xff] %v669_v37  ;;  %v683_v45 = vmax.f32 %v651_v38, 0.0  ;;  %v670_v46 = vmax.f32 %v638_v39, 0.0  ;;  %v652_v47 = vadd.f32 %v1249_v19, %v613_v40 }
  0xf6   : > { %717 = vst [vmem:[%s1268_s22 + $0x90] sm:$0xff] %v685_v41  ;;  %699 = vst [vmem:[%s1268_s22] sm:$0xff] %v667_v42  ;;  %v686_v48 = vmax.f32 %v654_v43, 0.0  ;;  %v668_v49 = vmax.f32 %v636_v44, 0.0  ;;  %v934_v50 = vpop.f32.mrb[4].mxu0 }
  0xf7   : > { %715 = vst [vmem:[%s1268_s22 + $0x80] sm:$0xff] %v683_v45  ;;  %702 = vst [vmem:[%s1268_s22 + $0x18] sm:$0xff] %v670_v46  ;;  %v684_v51 = vmax.f32 %v652_v47, 0.0  ;;  %v602_v52 = vmul.f32 %v934_v50, %v1244_v17  ;;  %v950_v53 = vpop.f32.mrb[4].mxu1  ;;  %v478_v54 = vpop.f32.mrb[5].mxu0 }
  0xf8   : > { %718 = vst [vmem:[%s1268_s22 + $0x98] sm:$0xff] %v686_v48  ;;  %700 = vst [vmem:[%s1268_s22 + $0x8] sm:$0xff] %v668_v49  ;;  %v618_v55 = vmul.f32 %v950_v53, %v1244_v17  ;;  %v600_v56 = vmul.f32 %v1244_v17, %v478_v54  ;;  %v542_v57 = vpop.f32.mrb[5].mxu1  ;;  %v935_v58 = vpop.f32.mrb[6].mxu0 }
  0xf9   : > { %716 = vst [vmem:[%s1268_s22 + $0x88] sm:$0xff] %v684_v51  ;;  %v641_v59 = vadd.f32 %v1249_v19, %v602_v52  ;;  %v616_v60 = vmul.f32 %v1244_v17, %v542_v57  ;;  %v603_v61 = vmul.f32 %v935_v58, %v1244_v17  ;;  %v951_v62 = vpop.f32.mrb[6].mxu1  ;;  %v481_v63 = vpop.f32.mrb[7].mxu0 }
  0xfa   : > { %v657_v0 = vadd.f32 %v1249_v19, %v618_v55  ;;  %v639_v1 = vadd.f32 %v1249_v19, %v600_v56  ;;  %v619_v2 = vmul.f32 %v951_v62, %v1244_v17  ;;  %v601_v3 = vmul.f32 %v1244_v17, %v481_v63  ;;  %v545_v4 = vpop.f32.mrb[7].mxu1 }
  0xfb   : > { %v673_v5 = vmax.f32 %v641_v59, 0.0  ;;  %v655_v6 = vadd.f32 %v1249_v19, %v616_v60  ;;  %v642_v7 = vadd.f32 %v1249_v19, %v603_v61  ;;  %v617_v8 = vmul.f32 %v1244_v17, %v545_v4 }
  0xfc   : > { %v689_v9 = vmax.f32 %v657_v0, 0.0  ;;  %v671_v10 = vmax.f32 %v639_v1, 0.0  ;;  %v658_v11 = vadd.f32 %v1249_v19, %v619_v2  ;;  %v640_v12 = vadd.f32 %v1249_v19, %v601_v3 }
  0xfd   : > { %705 = vst [vmem:[%s1268_s22 + $0x30] sm:$0xff] %v673_v5  ;;  %v687_v13 = vmax.f32 %v655_v6, 0.0  ;;  %v674_v14 = vmax.f32 %v642_v7, 0.0  ;;  %v656_v15 = vadd.f32 %v1249_v19, %v617_v8 }
  0xfe   : > { %721 = vst [vmem:[%s1268_s22 + $0xb0] sm:$0xff] %v689_v9  ;;  %703 = vst [vmem:[%s1268_s22 + $0x20] sm:$0xff] %v671_v10  ;;  %v690_v16 = vmax.f32 %v658_v11, 0.0  ;;  %v672_v18 = vmax.f32 %v640_v12, 0.0  ;;  %v938_v20 = vpop.f32.mrb[8].mxu0 }
  0xff   : > { %719 = vst [vmem:[%s1268_s22 + $0xa0] sm:$0xff] %v687_v13  ;;  %706 = vst [vmem:[%s1268_s22 + $0x38] sm:$0xff] %v674_v14  ;;  %v688_v21 = vmax.f32 %v656_v15, 0.0  ;;  %v606_v22 = vmul.f32 %v938_v20, %v1244_v17  ;;  %v954_v23 = vpop.f32.mrb[8].mxu1  ;;  %v494_v24 = vpop.f32.mrb[9].mxu0 }
 0x100   : > { %722 = vst [vmem:[%s1268_s22 + $0xb8] sm:$0xff] %v690_v16  ;;  %704 = vst [vmem:[%s1268_s22 + $0x28] sm:$0xff] %v672_v18  ;;  %v622_v25 = vmul.f32 %v954_v23, %v1244_v17  ;;  %v604_v26 = vmul.f32 %v1244_v17, %v494_v24  ;;  %v558_v27 = vpop.f32.mrb[9].mxu1  ;;  %v939_v28 = vpop.f32.mrb[10].mxu0 }
 0x101   : > { %720 = vst [vmem:[%s1268_s22 + $0xa8] sm:$0xff] %v688_v21  ;;  %v645_v29 = vadd.f32 %v1249_v19, %v606_v22  ;;  %v620_v30 = vmul.f32 %v1244_v17, %v558_v27  ;;  %v607_v31 = vmul.f32 %v939_v28, %v1244_v17  ;;  %v955_v32 = vpop.f32.mrb[10].mxu1  ;;  %v497_v33 = vpop.f32.mrb[11].mxu0 }
 0x102   : > { %v661_v34 = vadd.f32 %v1249_v19, %v622_v25  ;;  %v643_v35 = vadd.f32 %v1249_v19, %v604_v26  ;;  %v623_v36 = vmul.f32 %v955_v32, %v1244_v17  ;;  %v605_v37 = vmul.f32 %v1244_v17, %v497_v33  ;;  %v561_v38 = vpop.f32.mrb[11].mxu1 }
 0x103   : > { %v677_v39 = vmax.f32 %v645_v29, 0.0  ;;  %v659_v40 = vadd.f32 %v1249_v19, %v620_v30  ;;  %v646_v41 = vadd.f32 %v1249_v19, %v607_v31  ;;  %v621_v42 = vmul.f32 %v1244_v17, %v561_v38 }
 0x104   : > { %v693_v43 = vmax.f32 %v661_v34, 0.0  ;;  %v675_v44 = vmax.f32 %v643_v35, 0.0  ;;  %v662_v45 = vadd.f32 %v1249_v19, %v623_v36  ;;  %v644_v46 = vadd.f32 %v1249_v19, %v605_v37 }
 0x105   : > { %709 = vst [vmem:[%s1268_s22 + $0x50] sm:$0xff] %v677_v39  ;;  %v691_v47 = vmax.f32 %v659_v40, 0.0  ;;  %v678_v48 = vmax.f32 %v646_v41, 0.0  ;;  %v660_v49 = vadd.f32 %v1249_v19, %v621_v42 }
 0x106   : > { %725 = vst [vmem:[%s1268_s22 + $0xd0] sm:$0xff] %v693_v43  ;;  %707 = vst [vmem:[%s1268_s22 + $0x40] sm:$0xff] %v675_v44  ;;  %v694_v50 = vmax.f32 %v662_v45, 0.0  ;;  %v676_v51 = vmax.f32 %v644_v46, 0.0  ;;  %v942_v52 = vpop.f32.mrb[12].mxu0 }
 0x107   : > { %723 = vst [vmem:[%s1268_s22 + $0xc0] sm:$0xff] %v691_v47  ;;  %710 = vst [vmem:[%s1268_s22 + $0x58] sm:$0xff] %v678_v48  ;;  %v692_v53 = vmax.f32 %v660_v49, 0.0  ;;  %v610_v54 = vmul.f32 %v942_v52, %v1244_v17  ;;  %v958_v55 = vpop.f32.mrb[12].mxu1  ;;  %v510_v56 = vpop.f32.mrb[13].mxu0 }
 0x108   : > { %726 = vst [vmem:[%s1268_s22 + $0xd8] sm:$0xff] %v694_v50  ;;  %708 = vst [vmem:[%s1268_s22 + $0x48] sm:$0xff] %v676_v51  ;;  %v626_v57 = vmul.f32 %v958_v55, %v1244_v17  ;;  %v608_v58 = vmul.f32 %v1244_v17, %v510_v56  ;;  %v574_v59 = vpop.f32.mrb[13].mxu1  ;;  %v943_v60 = vpop.f32.mrb[14].mxu0 }
 0x109   : > { %724 = vst [vmem:[%s1268_s22 + $0xc8] sm:$0xff] %v692_v53  ;;  %v649_v61 = vadd.f32 %v1249_v19, %v610_v54  ;;  %v624_v62 = vmul.f32 %v1244_v17, %v574_v59  ;;  %v611_v63 = vmul.f32 %v943_v60, %v1244_v17  ;;  %v959_v0 = vpop.f32.mrb[14].mxu1  ;;  %v513_v1 = vpop.f32.mrb[15].mxu0 }
 0x10a   : > { %v665_v2 = vadd.f32 %v1249_v19, %v626_v57  ;;  %v647_v3 = vadd.f32 %v1249_v19, %v608_v58  ;;  %v627_v4 = vmul.f32 %v959_v0, %v1244_v17  ;;  %v609_v5 = vmul.f32 %v1244_v17, %v513_v1  ;;  %v577_v6 = vpop.f32.mrb[15].mxu1 }
 0x10b   : > { %v681_v7 = vmax.f32 %v649_v61, 0.0  ;;  %v663_v8 = vadd.f32 %v1249_v19, %v624_v62  ;;  %v650_v9 = vadd.f32 %v1249_v19, %v611_v63  ;;  %v625_v10 = vmul.f32 %v1244_v17, %v577_v6 }
 0x10c   : > { %v697_v11 = vmax.f32 %v665_v2, 0.0  ;;  %v679_v12 = vmax.f32 %v647_v3, 0.0  ;;  %v666_v13 = vadd.f32 %v1249_v19, %v627_v4  ;;  %v648_v14 = vadd.f32 %v1249_v19, %v609_v5 }
 0x10d   : > { %713 = vst [vmem:[%s1268_s22 + $0x70] sm:$0xff] %v681_v7  ;;  %v695_v15 = vmax.f32 %v663_v8, 0.0  ;;  %v682_v16 = vmax.f32 %v650_v9, 0.0  ;;  %v664_v18 = vadd.f32 %v1249_v19, %v625_v10 }
 0x10e   : > { %729 = vst [vmem:[%s1268_s22 + $0xf0] sm:$0xff] %v697_v11  ;;  %711 = vst [vmem:[%s1268_s22 + $0x60] sm:$0xff] %v679_v12  ;;  %v698_v17 = vmax.f32 %v666_v13, 0.0  ;;  %v680_v20 = vmax.f32 %v648_v14, 0.0 }
 0x10f   : > { %727 = vst [vmem:[%s1268_s22 + $0xe0] sm:$0xff] %v695_v15  ;;  %714 = vst [vmem:[%s1268_s22 + $0x78] sm:$0xff] %v682_v16  ;;  %v696_v21 = vmax.f32 %v664_v18, 0.0 }
 0x110   : > { %730 = vst [vmem:[%s1268_s22 + $0xf8] sm:$0xff] %v698_v17  ;;  %712 = vst [vmem:[%s1268_s22 + $0x68] sm:$0xff] %v680_v20 }
 0x111   : > { %728 = vst [vmem:[%s1268_s22 + $0xe8] sm:$0xff] %v696_v21 }
 0x112   : > { %1049 = shalt.err (!%p1046_p5)
}
 0x113   : > { %s1050_s10 = scalar_lea.hbm %s1351_s30, 4096  ;;  %s1054_s13 = scalar_lea.hbm %s1412_s4, 16384 }
 0x114   : > { %p1051_p6 = scmp.ne.s32.totalorder %s1351_s30, %s1050_s10  ;;  %p1055_p10 = scmp.lt.u32.totalorder %s1351_s30, %s1412_s4 }
 0x115   : > { %p1056_p11 = scmp.lt.u32.totalorder %s1054_s13, %s1050_s10  ;;  %p1058_p13 = scmp.lt.u32.totalorder %s1050_s10, %s1351_s30 }
 0x116   : > { %p1052_p7 = pnand %p1051_p6, %p1184_p4 }
 0x117   : > { %p1057_p12 = por %p1056_p11, %p1055_p10 }
 0x118   : > { %p1053_p9 = pneg %p1052_p7 }
 0x119   : > { %p1059_p0 = por %p1058_p13, %p1057_p12 }
 0x11b   : > { %p1060_p1 = pnand %p1059_p0, %p1053_p9 }
 0x11d   : > { %1063 = shalt.err (!%p1060_p1)
}
 0x11e   : > { %s1117_s22 = smov 128   ;;  %s1118_s24 = smov 8  }
 0x11f   : > { %962 = dma.vmem_to_hbm [thread:$0]  (%p1184_p4), %s1353_s26, 4096, %s1351_s30, %s1362_s5, %s1117_s22, %s1117_s22, %s1118_s24  }
 0x120 PF: > { %p968_p2 = scmp.ge.s32.totalorder %s1114_s20, 2  ;;  %s761_s18 = sand.u32 1, %s1094_s15  }
 0x121   : > { %s762_s29 = scalar_lea.sflag [#allocation3], %s761_s18 }
 0x122   : > { %p965_p3 = pnand %p968_p2, %p1191_p8 }
 0x124   : > { %1089 = dma.done.wait (!%p965_p3), %s762_s29, 4096  }
 0x125   : > { %1091 = vsyncadd (!%p965_p3), %s762_s29, 4294963200  ;;  %s17_s20 = sadd.s32 1, %s1114_s20   ;;  %s1415_s15 = smov %s1098_s16 }
 0x126   : > { %p14_p5 = scmp.ge.s32.totalorder %s17_s20, 6   ;;  %s1416_s16 = smov %s1102_s17 }
 0x127   : > { %s1417_s17 = smov %s1197_s28  ;;  %s1418_s18 = smov %s1110_s19 }
 0x128   : > { %s1419_s19 = smov %s1421_s23  ;;  %16 = sbr.rel (!%p14_p5) target bundleno = 4 (0x4), region = 80 }
 0x12f   :  { %767 = vsyncpa [#allocation3], 1 }
 0x130   :  { %769 = vsyncpa [#allocation3 + $0x1], 1 }

</bundles_post_ra>
